<compile_context>
chip_gen: v6e
topology: v6e:2x2x1
jax: 0.10.0
libtpu: 0.0.40
codegen_flags: <defaults>
</compile_context>

<pallas_src>
import functools

import jax
import jax.numpy as jnp
import numpy as np
from jax.experimental import pallas as pl
from jax.experimental.pallas import tpu as pltpu


# --------------------------------------------------------------------------- #
# Fused kernel.  Grid = (B, 2*nt):  t < nt  -> pooling phase,
#                                   t >= nt -> fused-output phase.
# --------------------------------------------------------------------------- #
def _bi_asy_fuse_kernel(
    xh_ref, xl_ref,
    whT_ref, bh_ref,
    wt1T_ref, bt1_ref, wt2T_ref, bt2_ref,
    wb1T_ref, bb1_ref, wb2T_ref, bb2_ref,
    out_ref,
    feat_stash, pool_acc, td_gate,
    *, nt, hw_true, hw_tile, pad, use_stash):
    t = pl.program_id(1)

    def conv_high(xh_bf16):
        return jnp.maximum(
            jnp.dot(whT_ref[...], xh_bf16, preferred_element_type=jnp.float32)
            + bh_ref[...], 0.0)                                    # (Co, HWT) f32

    # ---------------- phase 1: relu(conv_h(xh)) + accumulated global pool ----
    @pl.when(t < nt)
    def _phase1():
        @pl.when(t == 0)
        def _init():
            pool_acc[...] = jnp.zeros_like(pool_acc)

        # f32 tile from HBM; cast to bf16 on the VPU just before the MXU.
        feat = conv_high(xh_ref[0].astype(jnp.bfloat16))           # (Co, HWT) f32

        if use_stash:
            feat_stash[t] = feat.astype(jnp.bfloat16)

        # Spatial-padding columns must not leak relu(bias) into the pool.
        if pad > 0:
            col = t * hw_tile + jax.lax.broadcasted_iota(
                jnp.int32, (1, hw_tile), 1)
            feat_p = jnp.where(col < hw_true, feat, 0.0)
        else:
            feat_p = feat

        # Lane-preserving partial sums (VPU); one XLU lane-reduce per batch below.
        part = feat_p[:, 0:128]
        for g in range(1, hw_tile // 128):
            part = part + feat_p[:, g * 128:(g + 1) * 128]
        pool_acc[...] += part

        @pl.when(t == nt - 1)
        def _finalize():
            pooled = jnp.sum(pool_acc[...], axis=1, keepdims=True) * (1.0 / hw_true)
            hidden = jnp.maximum(
                jnp.dot(wt1T_ref[...], pooled, preferred_element_type=jnp.float32)
                + bt1_ref[...], 0.0)                               # (Cb, 1)
            td_gate[...] = jax.nn.sigmoid(
                jnp.dot(wt2T_ref[...], hidden, preferred_element_type=jnp.float32)
                + bt2_ref[...])                                    # (Co, 1)

    # ---------------- phase 2: bottom-up gate + fused output -----------------
    @pl.when(t >= nt)
    def _phase2():
        xl = xl_ref[0]                                             # (Cl, HWT) f32

        if use_stash:
            feat = feat_stash[t - nt].astype(jnp.float32)          # (Co, HWT)
        else:
            # Stash did not fit VMEM: recompute conv_h from the re-streamed xh tile.
            feat = conv_high(xh_ref[0].astype(jnp.bfloat16))

        bu_h = jnp.maximum(
            jnp.dot(wb1T_ref[...], xl.astype(jnp.bfloat16),
                    preferred_element_type=jnp.float32)
            + bb1_ref[...], 0.0)                                   # (Cb, HWT) f32
        bu_w = jax.nn.sigmoid(
            jnp.dot(wb2T_ref[...], bu_h.astype(jnp.bfloat16),
                    preferred_element_type=jnp.float32)
            + bb2_ref[...])                                        # (Co, HWT) f32

        out = td_gate[...] * xl + bu_w * feat                      # f32 (Cl == Co)
        out_ref[0] = out.astype(out_ref.dtype)


# ------------------------------- wrapper ------------------------------------ #
def _vmem_budget_bytes():
    try:
        phys = pltpu.get_tpu_info().vmem_capacity_bytes
    except Exception:
        phys = 64 * 1024 * 1024          # v7x-safe assumption if query fails
    # ~96 MiB on v5e/v6e (128 MiB physical), ~48 MiB on v7x (64 MiB physical).
    return min(int(phys * 3 // 4), 100 * 1024 * 1024)


def bi_asy_fuse(xh_nchw, xl_nchw, p, *, hw_tile_target=8192,
                allow_stash=True, out_dtype=jnp.bfloat16):
    B, Ch, H, W = xh_nchw.shape
    Bl, Cl, Hl, Wl = xl_nchw.shape
    assert (B, H, W) == (Bl, Hl, Wl), "xh / xl batch+spatial dims must match"
    Co = p["wh"].shape[1]
    Cb = p["wt1"].shape[1]
    assert Cl == Co, "BiAsyFuseLayer requires in_low_channels == out_channels"

    HW = H * W
    HWp = ((HW + 127) // 128) * 128      # lane-dense spatial axis
    pad = HWp - HW

    # NCHW kept: flatten spatial dims (free reshape) so H*W lands on lanes.
    xh_f = xh_nchw.reshape(B, Ch, HW)
    xl_f = xl_nchw.reshape(B, Cl, HW)
    if pad:
        xh_f = jnp.pad(xh_f, ((0, 0), (0, 0), (0, pad)))
        xl_f = jnp.pad(xl_f, ((0, 0), (0, 0), (0, pad)))

    # ---- tile size + stash decision from an explicit per-tile VMEM formula ----
    budget = _vmem_budget_bytes()
    w_bytes = (2 * (Co * Ch + Cb * Cl + Co * Cb)       # bf16 conv weights
               + 4 * (Cb * Co + Co * Cb)               # f32 gate-MLP weights
               + 4 * (3 * Co + 2 * Cb))                # f32 biases

    def tile_bytes(hwt, stash):
        io = 2 * (Ch * hwt * 4 + Cl * hwt * 4 + Co * hwt * 2)   # dbl-buffered blocks
        tmp = (2 * Co + Cb + max(Ch, Cl)) * hwt * 4             # f32 temporaries
        st = Co * (HWp if stash else hwt) * 2                   # bf16 xh_feat stash
        return io + tmp + st + Co * 128 * 4 + 2 * w_bytes

    target = max(128, min(hw_tile_target, HWp))
    cands = [c for c in range(128, target + 1, 128) if HWp % c == 0]

    def pick(stash):
        for c in sorted(cands, reverse=True):
            if tile_bytes(c, stash) <= budget:
                return c
        return None

    HWT = pick(True) if allow_stash else None
    use_stash = HWT is not None
    if HWT is None:
        HWT = pick(False)
    if HWT is None:
        # TODO(synk): extreme Co*HW would also need channel tiling; run smallest.
        HWT, use_stash = 128, False
    NT = HWp // HWT

    # ---- BN-folded weights, (Cout, Cin) kernel layout --------------------------
    whT = p["wh"].T.astype(jnp.bfloat16)       # (Co, Ch)   per-pixel convs -> bf16
    wb1T = p["wb1"].T.astype(jnp.bfloat16)     # (Cb, Cl)
    wb2T = p["wb2"].T.astype(jnp.bfloat16)     # (Co, Cb)
    wt1T = p["wt1"].T.astype(jnp.float32)      # (Cb, Co)   tiny gate MLP stays f32
    wt2T = p["wt2"].T.astype(jnp.float32)      # (Co, Cb)
    bh = p["bh"].reshape(Co, 1).astype(jnp.float32)
    bt1 = p["bt1"].reshape(Cb, 1).astype(jnp.float32)
    bt2 = p["bt2"].reshape(Co, 1).astype(jnp.float32)
    bb1 = p["bb1"].reshape(Cb, 1).astype(jnp.float32)
    bb2 = p["bb2"].reshape(Co, 1).astype(jnp.float32)

    # Phase-aware index maps (clamped indices are revisit-skipped by the pipeline).
    if use_stash:
        xh_map = lambda b, t: (b, 0, jnp.minimum(t, NT - 1))
    else:
        xh_map = lambda b, t: (b, 0, jnp.where(t < NT, t, t - NT))
    xl_map = lambda b, t: (b, 0, jnp.maximum(t - NT, 0))
    w_map = lambda b, t: (0, 0)

    kernel = functools.partial(
        _bi_asy_fuse_kernel, nt=NT, hw_true=HW, hw_tile=HWT, pad=pad,
        use_stash=use_stash)

    out_flat = pl.pallas_call(
        kernel,
        out_shape=jax.ShapeDtypeStruct((B, Co, HWp), out_dtype),
        grid=(B, 2 * NT),
        in_specs=[
            pl.BlockSpec((1, Ch, HWT), xh_map),
            pl.BlockSpec((1, Cl, HWT), xl_map),
            pl.BlockSpec((Co, Ch), w_map), pl.BlockSpec((Co, 1), w_map),
            pl.BlockSpec((Cb, Co), w_map), pl.BlockSpec((Cb, 1), w_map),
            pl.BlockSpec((Co, Cb), w_map), pl.BlockSpec((Co, 1), w_map),
            pl.BlockSpec((Cb, Cl), w_map), pl.BlockSpec((Cb, 1), w_map),
            pl.BlockSpec((Co, Cb), w_map), pl.BlockSpec((Co, 1), w_map),
        ],
        out_specs=pl.BlockSpec((1, Co, HWT), xl_map),
        scratch_shapes=[
            pltpu.VMEM((NT if use_stash else 1, Co, HWT), jnp.bfloat16),
            pltpu.VMEM((Co, 128), jnp.float32),
            pltpu.VMEM((Co, 1), jnp.float32),
        ],
        compiler_params=pltpu.CompilerParams(
            dimension_semantics=("parallel", "arbitrary"),
            vmem_limit_bytes=budget),
    )(xh_f, xl_f, whT, bh, wt1T, bt1, wt2T, bt2, wb1T, bb1, wb2T, bb2)

    out = out_flat[:, :, :HW] if pad else out_flat
    return out.reshape(B, Co, H, W)


# ----------------------- parameter init + BN folding ------------------------ #
def _fold_bn(w, b, gamma, beta, mean, var, eps=1e-5):
    """Fold eval-mode BatchNorm into a 1x1 conv expressed as x @ w + b."""
    scale = gamma / jnp.sqrt(var + eps)
    w_f = (w * scale[None, :]).astype(jnp.float32)
    b_f = ((b - mean) * scale + beta).astype(jnp.float32)
    return w_f, b_f


def init_params(key, ch_high, ch_low, ch_out, r=4):
    cb = ch_out // r
    keys = iter(jax.random.split(key, 40))

    def conv_bn(cin, cout):
        w = jax.random.normal(next(keys), (cin, cout), jnp.float32) / np.sqrt(cin)
        b = 0.1 * jax.random.normal(next(keys), (cout,), jnp.float32)
        gamma = 1.0 + 0.1 * jax.random.normal(next(keys), (cout,), jnp.float32)
        beta = 0.1 * jax.random.normal(next(keys), (cout,), jnp.float32)
        mean = 0.1 * jax.random.normal(next(keys), (cout,), jnp.float32)
        var = jnp.abs(1.0 + 0.1 * jax.random.normal(next(keys), (cout,), jnp.float32))
        return _fold_bn(w, b, gamma, beta, mean, var)

    wh, bh = conv_bn(ch_high, ch_out)       # feature_high
    wt1, bt1 = conv_bn(ch_out, cb)          # topdown conv1
    wt2, bt2 = conv_bn(cb, ch_out)          # topdown conv2
    wb1, bb1 = conv_bn(ch_low, cb)          # bottomup conv1
    wb2, bb2 = conv_bn(cb, ch_out)          # bottomup conv2
    return dict(wh=wh, bh=bh, wt1=wt1, bt1=bt1, wt2=wt2, bt2=bt2,
                wb1=wb1, bb1=bb1, wb2=wb2, bb2=bb2)


# ----------------------------- plain-JAX reference --------------------------- #
def reference(xh, xl, p):
    def conv1x1(x, w, b):   # x: NCHW, w: (Cin, Cout)
        return jnp.einsum("bchw,cd->bdhw", x, w) + b.reshape(1, -1, 1, 1)

    xh_f = jax.nn.relu(conv1x1(xh, p["wh"], p["bh"]))
    pooled = jnp.mean(xh_f, axis=(2, 3), keepdims=True)
    td = jax.nn.relu(conv1x1(pooled, p["wt1"], p["bt1"]))
    td = jax.nn.sigmoid(conv1x1(td, p["wt2"], p["bt2"]))
    bu = jax.nn.relu(conv1x1(xl, p["wb1"], p["bb1"]))
    bu = jax.nn.sigmoid(conv1x1(bu, p["wb2"], p["bb2"]))
    return td * xl + bu * xh_f


# ----------------------------------- main ------------------------------------ #
if __name__ == "__main__":
    B, CH_HIGH, CH_LOW, CO = 2, 8, 16, 16     # in_low_channels == out_channels
    key = jax.random.PRNGKey(0)
    k_xh, k_xl, k_xh2, k_xl2, k_p = jax.random.split(key, 5)
    params = init_params(k_p, CH_HIGH, CH_LOW, CO, r=4)

    # Case 1: HW = 256 with hw_tile_target=128 -> 2 spatial tiles: exercises the
    # multi-tile pool accumulation, the VMEM xh_feat stash and both phases.
    xh = jax.random.normal(k_xh, (B, CH_HIGH, 16, 16), jnp.float32)
    xl = jax.random.normal(k_xl, (B, CH_LOW, 16, 16), jnp.float32)
    out = jax.block_until_ready(bi_asy_fuse(xh, xl, params, hw_tile_target=128))
    ref = reference(xh, xl, params)
    assert out.shape == (B, CO, 16, 16)
    np.testing.assert_allclose(np.asarray(out.astype(jnp.float32)),
                               np.asarray(ref), rtol=5e-2, atol=1.5e-1)

    # Case 2: HW = 100 (padded to 128) with the stash disabled: exercises the
    # spatial-padding pool mask and the conv_h-recompute fallback path.
    xh2 = jax.random.normal(k_xh2, (B, CH_HIGH, 10, 10), jnp.float32)
    xl2 = jax.random.normal(k_xl2, (B, CH_LOW, 10, 10), jnp.float32)
    out2 = jax.block_until_ready(bi_asy_fuse(xh2, xl2, params, allow_stash=False))
    ref2 = reference(xh2, xl2, params)
    np.testing.assert_allclose(np.asarray(out2.astype(jnp.float32)),
                               np.asarray(ref2), rtol=5e-2, atol=1.5e-1)

    print("KERNEL_OK")
</pallas_src>

<mosaic_0001>
module attributes {stable_mosaic.version = 11 : i64} {
  func.func @_bi_asy_fuse_kernel(%arg0: i32, %arg1: i32, %arg2: memref<1x8x128xf32, #tpu.memory_space<vmem>>, %arg3: memref<1x16x128xf32, #tpu.memory_space<vmem>>, %arg4: memref<16x8xbf16, #tpu.memory_space<vmem>>, %arg5: memref<16x1xf32, #tpu.memory_space<vmem>>, %arg6: memref<4x16xf32, #tpu.memory_space<vmem>>, %arg7: memref<4x1xf32, #tpu.memory_space<vmem>>, %arg8: memref<16x4xf32, #tpu.memory_space<vmem>>, %arg9: memref<16x1xf32, #tpu.memory_space<vmem>>, %arg10: memref<4x16xbf16, #tpu.memory_space<vmem>>, %arg11: memref<4x1xf32, #tpu.memory_space<vmem>>, %arg12: memref<16x4xbf16, #tpu.memory_space<vmem>>, %arg13: memref<16x1xf32, #tpu.memory_space<vmem>>, %arg14: memref<1x16x128xbf16, #tpu.memory_space<vmem>>, %arg15: memref<2x16x128xbf16, #tpu.memory_space<vmem>>, %arg16: memref<16x128xf32, #tpu.memory_space<vmem>>, %arg17: memref<16x1xf32, #tpu.memory_space<vmem>>) attributes {dimension_semantics = [#tpu.dimension_semantics<parallel>, #tpu.dimension_semantics<arbitrary>], iteration_bounds = array<i64: 2, 4>, scalar_prefetch = 0 : i64, scratch_operands = 3 : i64, tpu.core_type = #tpu.core_type<tc>, window_params = [{transform_indices = @transform_0, window_bounds = array<i64: 1, 8, 128>}, {transform_indices = @transform_1, window_bounds = array<i64: 1, 16, 128>}, {pipeline_mode = #tpu.pipeline_mode<synchronous>, transform_indices = @transform_2, window_bounds = array<i64: 16, 8>}, {pipeline_mode = #tpu.pipeline_mode<synchronous>, transform_indices = @transform_3, window_bounds = array<i64: 16, 1>}, {pipeline_mode = #tpu.pipeline_mode<synchronous>, transform_indices = @transform_4, window_bounds = array<i64: 4, 16>}, {pipeline_mode = #tpu.pipeline_mode<synchronous>, transform_indices = @transform_5, window_bounds = array<i64: 4, 1>}, {pipeline_mode = #tpu.pipeline_mode<synchronous>, transform_indices = @transform_6, window_bounds = array<i64: 16, 4>}, {pipeline_mode = #tpu.pipeline_mode<synchronous>, transform_indices = @transform_7, window_bounds = array<i64: 16, 1>}, {pipeline_mode = #tpu.pipeline_mode<synchronous>, transform_indices = @transform_8, window_bounds = array<i64: 4, 16>}, {pipeline_mode = #tpu.pipeline_mode<synchronous>, transform_indices = @transform_9, window_bounds = array<i64: 4, 1>}, {pipeline_mode = #tpu.pipeline_mode<synchronous>, transform_indices = @transform_10, window_bounds = array<i64: 16, 4>}, {pipeline_mode = #tpu.pipeline_mode<synchronous>, transform_indices = @transform_11, window_bounds = array<i64: 16, 1>}, {transform_indices = @transform_12, window_bounds = array<i64: 1, 16, 128>}]} {
    %c2_i32 = arith.constant 2 : i32
    %0 = arith.cmpi slt, %arg1, %c2_i32 : i32
    %1 = arith.extui %0 : i1 to i32
    %c0_i32 = arith.constant 0 : i32
    %2 = arith.cmpi ne, %1, %c0_i32 : i32
    scf.if %2 {
      %c0_i32_2 = arith.constant 0 : i32
      %6 = arith.cmpi eq, %arg1, %c0_i32_2 : i32
      %7 = arith.extui %6 : i1 to i32
      %c0_i32_3 = arith.constant 0 : i32
      %8 = arith.cmpi ne, %7, %c0_i32_3 : i32
      scf.if %8 {
        %cst_18 = arith.constant 0.000000e+00 : f32
        %30 = vector.broadcast %cst_18 : f32 to vector<16x128xf32>
        %c0_19 = arith.constant 0 : index
        %c0_20 = arith.constant 0 : index
        %31 = vector.load %arg16[%c0_19, %c0_20] : memref<16x128xf32, #tpu.memory_space<vmem>>, vector<16x128xf32>
        tpu.vector_store %arg16[%c0_19, %c0_20], %30 {strides = array<i32>} : memref<16x128xf32, #tpu.memory_space<vmem>>, vector<16x128xf32>,
      } else {
      }
      %c0 = arith.constant 0 : index
      %c0_4 = arith.constant 0 : index
      %c0_5 = arith.constant 0 : index
      %9 = vector.load %arg2[%c0, %c0_4, %c0_5] : memref<1x8x128xf32, #tpu.memory_space<vmem>>, vector<1x8x128xf32>
      %10 = vector.shape_cast %9 : vector<1x8x128xf32> to vector<8x128xf32>
      %11 = arith.truncf %10 : vector<8x128xf32> to vector<8x128xbf16>
      %c0_6 = arith.constant 0 : index
      %c0_7 = arith.constant 0 : index
      %12 = vector.load %arg4[%c0_6, %c0_7] : memref<16x8xbf16, #tpu.memory_space<vmem>>, vector<16x8xbf16>
      %cst = arith.constant dense<0.000000e+00> : vector<16x128xf32>
      %13 = tpu.matmul %12, %11, %cst {dimension_numbers = #tpu.dot_dimension_numbers<[1], [0], [0], [1], [0, 0, 1, 1], [], []>} : vector<16x8xbf16>, vector<8x128xbf16>, vector<16x128xf32> -> vector<16x128xf32>
      %c0_8 = arith.constant 0 : index
      %c0_9 = arith.constant 0 : index
      %14 = vector.load %arg5[%c0_8, %c0_9] : memref<16x1xf32, #tpu.memory_space<vmem>>, vector<16x1xf32>
      %15 = vector.broadcast %14 : vector<16x1xf32> to vector<16x128xf32>
      %16 = arith.addf %13, %15 : vector<16x128xf32>
      %cst_10 = arith.constant 0.000000e+00 : f32
      %17 = vector.broadcast %cst_10 : f32 to vector<16x128xf32>
      %18 = arith.maximumf %16, %17 : vector<16x128xf32>
      %19 = arith.truncf %18 : vector<16x128xf32> to vector<16x128xbf16>
      %20 = arith.index_cast %arg1 : i32 to index
      %c0_11 = arith.constant 0 : index
      %c0_12 = arith.constant 0 : index
      %21 = vector.load %arg15[%20, %c0_11, %c0_12] : memref<2x16x128xbf16, #tpu.memory_space<vmem>>, vector<1x16x128xbf16>
      %22 = vector.shape_cast %21 : vector<1x16x128xbf16> to vector<16x128xbf16>
      %23 = vector.shape_cast %19 : vector<16x128xbf16> to vector<1x16x128xbf16>
      tpu.vector_store %arg15[%20, %c0_11, %c0_12], %23 {strides = array<i32>} : memref<2x16x128xbf16, #tpu.memory_space<vmem>>, vector<1x16x128xbf16>,
      %c0_13 = arith.constant 0 : index
      %c0_14 = arith.constant 0 : index
      %24 = vector.load %arg16[%c0_13, %c0_14] : memref<16x128xf32, #tpu.memory_space<vmem>>, vector<16x128xf32>
      %25 = arith.addf %24, %18 : vector<16x128xf32>
      %c0_15 = arith.constant 0 : index
      %c0_16 = arith.constant 0 : index
      %26 = vector.load %arg16[%c0_15, %c0_16] : memref<16x128xf32, #tpu.memory_space<vmem>>, vector<16x128xf32>
      tpu.vector_store %arg16[%c0_15, %c0_16], %25 {strides = array<i32>} : memref<16x128xf32, #tpu.memory_space<vmem>>, vector<16x128xf32>,
      %c1_i32 = arith.constant 1 : i32
      %27 = arith.cmpi eq, %arg1, %c1_i32 : i32
      %28 = arith.extui %27 : i1 to i32
      %c0_i32_17 = arith.constant 0 : i32
      %29 = arith.cmpi ne, %28, %c0_i32_17 : i32
      scf.if %29 {
        %c0_18 = arith.constant 0 : index
        %c0_19 = arith.constant 0 : index
        %30 = vector.load %arg16[%c0_18, %c0_19] : memref<16x128xf32, #tpu.memory_space<vmem>>, vector<16x128xf32>
        %cst_20 = arith.constant dense<0.000000e+00> : vector<16xf32>
        %31 = vector.multi_reduction <add>, %30, %cst_20 [1] : vector<16x128xf32> to vector<16xf32>
        %32 = vector.shape_cast %31 : vector<16xf32> to vector<16x1xf32>
        %cst_21 = arith.constant 3.906250e-03 : f32
        %33 = vector.broadcast %cst_21 : f32 to vector<16x1xf32>
        %34 = arith.mulf %32, %33 : vector<16x1xf32>
        %c0_22 = arith.constant 0 : index
        %c0_23 = arith.constant 0 : index
        %35 = vector.load %arg6[%c0_22, %c0_23] : memref<4x16xf32, #tpu.memory_space<vmem>>, vector<4x16xf32>
        %cst_24 = arith.constant dense<0.000000e+00> : vector<4x1xf32>
        %36 = tpu.matmul %35, %34, %cst_24 {dimension_numbers = #tpu.dot_dimension_numbers<[1], [0], [0], [1], [0, 0, 1, 1], [], []>} : vector<4x16xf32>, vector<16x1xf32>, vector<4x1xf32> -> vector<4x1xf32>
        %c0_25 = arith.constant 0 : index
        %c0_26 = arith.constant 0 : index
        %37 = vector.load %arg7[%c0_25, %c0_26] : memref<4x1xf32, #tpu.memory_space<vmem>>, vector<4x1xf32>
        %38 = arith.addf %36, %37 : vector<4x1xf32>
        %cst_27 = arith.constant 0.000000e+00 : f32
        %39 = vector.broadcast %cst_27 : f32 to vector<4x1xf32>
        %40 = arith.maximumf %38, %39 : vector<4x1xf32>
        %c0_28 = arith.constant 0 : index
        %c0_29 = arith.constant 0 : index
        %41 = vector.load %arg8[%c0_28, %c0_29] : memref<16x4xf32, #tpu.memory_space<vmem>>, vector<16x4xf32>
        %cst_30 = arith.constant dense<0.000000e+00> : vector<16x1xf32>
        %42 = tpu.matmul %41, %40, %cst_30 {dimension_numbers = #tpu.dot_dimension_numbers<[1], [0], [0], [1], [0, 0, 1, 1], [], []>} : vector<16x4xf32>, vector<4x1xf32>, vector<16x1xf32> -> vector<16x1xf32>
        %c0_31 = arith.constant 0 : index
        %c0_32 = arith.constant 0 : index
        %43 = vector.load %arg9[%c0_31, %c0_32] : memref<16x1xf32, #tpu.memory_space<vmem>>, vector<16x1xf32>
        %44 = arith.addf %42, %43 : vector<16x1xf32>
        %45 = arith.negf %44 : vector<16x1xf32>
        %46 = math.exp %45 : vector<16x1xf32>
        %cst_33 = arith.constant 1.000000e+00 : f32
        %47 = vector.broadcast %cst_33 : f32 to vector<16x1xf32>
        %48 = arith.addf %47, %46 : vector<16x1xf32>
        %49 = arith.divf %47, %48 : vector<16x1xf32>
        %c0_34 = arith.constant 0 : index
        %c0_35 = arith.constant 0 : index
        %50 = vector.load %arg17[%c0_34, %c0_35] : memref<16x1xf32, #tpu.memory_space<vmem>>, vector<16x1xf32>
        tpu.vector_store %arg17[%c0_34, %c0_35], %49 {strides = array<i32>} : memref<16x1xf32, #tpu.memory_space<vmem>>, vector<16x1xf32>,
      } else {
      }
    } else {
    }
    %c2_i32_0 = arith.constant 2 : i32
    %3 = arith.cmpi sge, %arg1, %c2_i32_0 : i32
    %4 = arith.extui %3 : i1 to i32
    %c0_i32_1 = arith.constant 0 : i32
    %5 = arith.cmpi ne, %4, %c0_i32_1 : i32
    scf.if %5 {
      %c0 = arith.constant 0 : index
      %c0_2 = arith.constant 0 : index
      %c0_3 = arith.constant 0 : index
      %6 = vector.load %arg3[%c0, %c0_2, %c0_3] : memref<1x16x128xf32, #tpu.memory_space<vmem>>, vector<1x16x128xf32>
      %7 = vector.shape_cast %6 : vector<1x16x128xf32> to vector<16x128xf32>
      %c2_i32_4 = arith.constant 2 : i32
      %8 = arith.subi %arg1, %c2_i32_4 : i32
      %9 = arith.index_cast %8 : i32 to index
      %c0_5 = arith.constant 0 : index
      %c0_6 = arith.constant 0 : index
      %10 = vector.load %arg15[%9, %c0_5, %c0_6] : memref<2x16x128xbf16, #tpu.memory_space<vmem>>, vector<1x16x128xbf16>
      %11 = vector.shape_cast %10 : vector<1x16x128xbf16> to vector<16x128xbf16>
      %12 = arith.extf %11 : vector<16x128xbf16> to vector<16x128xf32>
      %c0_7 = arith.constant 0 : index
      %c0_8 = arith.constant 0 : index
      %13 = vector.load %arg10[%c0_7, %c0_8] : memref<4x16xbf16, #tpu.memory_space<vmem>>, vector<4x16xbf16>
      %14 = arith.truncf %7 : vector<16x128xf32> to vector<16x128xbf16>
      %cst = arith.constant dense<0.000000e+00> : vector<4x128xf32>
      %15 = tpu.matmul %13, %14, %cst {dimension_numbers = #tpu.dot_dimension_numbers<[1], [0], [0], [1], [0, 0, 1, 1], [], []>} : vector<4x16xbf16>, vector<16x128xbf16>, vector<4x128xf32> -> vector<4x128xf32>
      %c0_9 = arith.constant 0 : index
      %c0_10 = arith.constant 0 : index
      %16 = vector.load %arg11[%c0_9, %c0_10] : memref<4x1xf32, #tpu.memory_space<vmem>>, vector<4x1xf32>
      %17 = vector.broadcast %16 : vector<4x1xf32> to vector<4x128xf32>
      %18 = arith.addf %15, %17 : vector<4x128xf32>
      %cst_11 = arith.constant 0.000000e+00 : f32
      %19 = vector.broadcast %cst_11 : f32 to vector<4x128xf32>
      %20 = arith.maximumf %18, %19 : vector<4x128xf32>
      %c0_12 = arith.constant 0 : index
      %c0_13 = arith.constant 0 : index
      %21 = vector.load %arg12[%c0_12, %c0_13] : memref<16x4xbf16, #tpu.memory_space<vmem>>, vector<16x4xbf16>
      %22 = arith.truncf %20 : vector<4x128xf32> to vector<4x128xbf16>
      %cst_14 = arith.constant dense<0.000000e+00> : vector<16x128xf32>
      %23 = tpu.matmul %21, %22, %cst_14 {dimension_numbers = #tpu.dot_dimension_numbers<[1], [0], [0], [1], [0, 0, 1, 1], [], []>} : vector<16x4xbf16>, vector<4x128xbf16>, vector<16x128xf32> -> vector<16x128xf32>
      %c0_15 = arith.constant 0 : index
      %c0_16 = arith.constant 0 : index
      %24 = vector.load %arg13[%c0_15, %c0_16] : memref<16x1xf32, #tpu.memory_space<vmem>>, vector<16x1xf32>
      %25 = vector.broadcast %24 : vector<16x1xf32> to vector<16x128xf32>
      %26 = arith.addf %23, %25 : vector<16x128xf32>
      %27 = arith.negf %26 : vector<16x128xf32>
      %28 = math.exp %27 : vector<16x128xf32>
      %cst_17 = arith.constant 1.000000e+00 : f32
      %29 = vector.broadcast %cst_17 : f32 to vector<16x128xf32>
      %30 = arith.addf %29, %28 : vector<16x128xf32>
      %31 = arith.divf %29, %30 : vector<16x128xf32>
      %c0_18 = arith.constant 0 : index
      %c0_19 = arith.constant 0 : index
      %32 = vector.load %arg17[%c0_18, %c0_19] : memref<16x1xf32, #tpu.memory_space<vmem>>, vector<16x1xf32>
      %33 = vector.broadcast %32 : vector<16x1xf32> to vector<16x128xf32>
      %34 = arith.mulf %33, %7 : vector<16x128xf32>
      %35 = arith.mulf %31, %12 : vector<16x128xf32>
      %36 = arith.addf %34, %35 : vector<16x128xf32>
      %37 = arith.truncf %36 : vector<16x128xf32> to vector<16x128xbf16>
      %c0_20 = arith.constant 0 : index
      %c0_21 = arith.constant 0 : index
      %c0_22 = arith.constant 0 : index
      %38 = vector.load %arg14[%c0_20, %c0_21, %c0_22] : memref<1x16x128xbf16, #tpu.memory_space<vmem>>, vector<1x16x128xbf16>
      %39 = vector.shape_cast %38 : vector<1x16x128xbf16> to vector<16x128xbf16>
      %40 = vector.shape_cast %37 : vector<16x128xbf16> to vector<1x16x128xbf16>
      tpu.vector_store %arg14[%c0_20, %c0_21, %c0_22], %40 {strides = array<i32>} : memref<1x16x128xbf16, #tpu.memory_space<vmem>>, vector<1x16x128xbf16>,
    } else {
    }
    return
  }
  func.func @transform_0(%arg0: i32, %arg1: i32) -> (i32, i32, i32) {
    %c1_i32 = arith.constant 1 : i32
    %0 = arith.minsi %arg1, %c1_i32 : i32
    %c0_i32 = arith.constant 0 : i32
    %c0_i32_0 = arith.constant 0 : i32
    return %arg0, %c0_i32, %0 : i32, i32, i32
  }
  func.func @transform_1(%arg0: i32, %arg1: i32) -> (i32, i32, i32) {
    %c2_i32 = arith.constant 2 : i32
    %0 = arith.subi %arg1, %c2_i32 : i32
    %c0_i32 = arith.constant 0 : i32
    %1 = arith.maxsi %0, %c0_i32 : i32
    %c0_i32_0 = arith.constant 0 : i32
    %c0_i32_1 = arith.constant 0 : i32
    return %arg0, %c0_i32_0, %1 : i32, i32, i32
  }
  func.func @transform_2(%arg0: i32, %arg1: i32) -> (i32, i32) {
    %c0_i32 = arith.constant 0 : i32
    %c0_i32_0 = arith.constant 0 : i32
    %c0_i32_1 = arith.constant 0 : i32
    return %c0_i32, %c0_i32_0 : i32, i32
  }
  func.func @transform_3(%arg0: i32, %arg1: i32) -> (i32, i32) {
    %c0_i32 = arith.constant 0 : i32
    %c0_i32_0 = arith.constant 0 : i32
    %c0_i32_1 = arith.constant 0 : i32
    return %c0_i32, %c0_i32_0 : i32, i32
  }
  func.func @transform_4(%arg0: i32, %arg1: i32) -> (i32, i32) {
    %c0_i32 = arith.constant 0 : i32
    %c0_i32_0 = arith.constant 0 : i32
    %c0_i32_1 = arith.constant 0 : i32
    return %c0_i32, %c0_i32_0 : i32, i32
  }
  func.func @transform_5(%arg0: i32, %arg1: i32) -> (i32, i32) {
    %c0_i32 = arith.constant 0 : i32
    %c0_i32_0 = arith.constant 0 : i32
    %c0_i32_1 = arith.constant 0 : i32
    return %c0_i32, %c0_i32_0 : i32, i32
  }
  func.func @transform_6(%arg0: i32, %arg1: i32) -> (i32, i32) {
    %c0_i32 = arith.constant 0 : i32
    %c0_i32_0 = arith.constant 0 : i32
    %c0_i32_1 = arith.constant 0 : i32
    return %c0_i32, %c0_i32_0 : i32, i32
  }
  func.func @transform_7(%arg0: i32, %arg1: i32) -> (i32, i32) {
    %c0_i32 = arith.constant 0 : i32
    %c0_i32_0 = arith.constant 0 : i32
    %c0_i32_1 = arith.constant 0 : i32
    return %c0_i32, %c0_i32_0 : i32, i32
  }
  func.func @transform_8(%arg0: i32, %arg1: i32) -> (i32, i32) {
    %c0_i32 = arith.constant 0 : i32
    %c0_i32_0 = arith.constant 0 : i32
    %c0_i32_1 = arith.constant 0 : i32
    return %c0_i32, %c0_i32_0 : i32, i32
  }
  func.func @transform_9(%arg0: i32, %arg1: i32) -> (i32, i32) {
    %c0_i32 = arith.constant 0 : i32
    %c0_i32_0 = arith.constant 0 : i32
    %c0_i32_1 = arith.constant 0 : i32
    return %c0_i32, %c0_i32_0 : i32, i32
  }
  func.func @transform_10(%arg0: i32, %arg1: i32) -> (i32, i32) {
    %c0_i32 = arith.constant 0 : i32
    %c0_i32_0 = arith.constant 0 : i32
    %c0_i32_1 = arith.constant 0 : i32
    return %c0_i32, %c0_i32_0 : i32, i32
  }
  func.func @transform_11(%arg0: i32, %arg1: i32) -> (i32, i32) {
    %c0_i32 = arith.constant 0 : i32
    %c0_i32_0 = arith.constant 0 : i32
    %c0_i32_1 = arith.constant 0 : i32
    return %c0_i32, %c0_i32_0 : i32, i32
  }
  func.func @transform_12(%arg0: i32, %arg1: i32) -> (i32, i32, i32) {
    %c2_i32 = arith.constant 2 : i32
    %0 = arith.subi %arg1, %c2_i32 : i32
    %c0_i32 = arith.constant 0 : i32
    %1 = arith.maxsi %0, %c0_i32 : i32
    %c0_i32_0 = arith.constant 0 : i32
    %c0_i32_1 = arith.constant 0 : i32
    return %arg0, %c0_i32_0, %1 : i32, i32, i32
  }
}

</mosaic_0001>

<bundles_post_ra>
// kernel: tpu_custom_call.1
= control target key start
LH: loop header
LB: loop body
LE: loop exit
PB: predicated region body
PF: predicated region fallthrough
CT: control target
= control target key end

     0   :  { %s1736_s0 = inlined_call_operand.vmem [shape: f32[2,8,256], index: 0, kind: input, shape index: {}]   ;;  %s1737_s1 = inlined_call_operand.vmem [shape: f32[2,16,256], index: 1, kind: input, shape index: {}]   ;;  %s1738_s2 = inlined_call_operand.vmem [shape: bf16[16,8], index: 2, kind: input, shape index: {}]   ;;  %s1739_s3 = inlined_call_operand.vmem [shape: f32[16,1], index: 3, kind: input, shape index: {}]   ;;  %s1740_s4 = inlined_call_operand.vmem [shape: f32[4,16], index: 4, kind: input, shape index: {}]   ;;  %s1741_s5 = inlined_call_operand.vmem [shape: f32[4,1], index: 5, kind: input, shape index: {}]   ;;  %s1742_s6 = inlined_call_operand.vmem [shape: f32[16,4], index: 6, kind: input, shape index: {}]   ;;  %s1743_s7 = inlined_call_operand.vmem [shape: f32[16,1], index: 7, kind: input, shape index: {}]   ;;  %s1744_s8 = inlined_call_operand.vmem [shape: bf16[4,16], index: 8, kind: input, shape index: {}]   ;;  %s1745_s9 = inlined_call_operand.vmem [shape: f32[4,1], index: 9, kind: input, shape index: {}]   ;;  %s1746_s10 = inlined_call_operand.vmem [shape: bf16[16,4], index: 10, kind: input, shape index: {}]   ;;  %s1747_s11 = inlined_call_operand.vmem [shape: f32[16,1], index: 11, kind: input, shape index: {}]   ;;  %s1748_s12 = inlined_call_operand.hbm [shape: bf16[2,16,256], index: 12, kind: output, shape index: {}]  }
   0x1   :  { %1755 = sst [smem:[#allocation15_spill]] %s1737_s1 }
   0x2   :  { %1756 = sst [smem:[#allocation16_spill]] %s1748_s12 }
   0x3   :  { %17 = vsyncpa [#allocation7], 0 }
   0x4   :  { %19 = vsyncpa [#allocation7 + $0x1], 0  ;;  %s1519_s21 = smov 0   ;;  %s1521_s22 = smov 0  }
   0x5   :  { %s1523_s23 = smov 0   ;;  %s1525_s24 = smov 0  }
   0x6   :  { %s1527_s25 = smov 0   ;;  %s1529_s26 = smov 0  }
   0x7   :  { %s1531_s27 = smov 0   ;;  %s1533_s28 = smov 0  }
   0x8 LB: > { %1757 = sst [smem:[#allocation9_spill]] %s1411_s21  ;;  %s1129_s29 = sadd.s32 4294967295, %s1439_s28   ;;  %s1439_s28 = sphi %s1533_s28, %s25_s28   ;;  %s1435_s27 = sphi %s1531_s27, %s1777_s27   ;;  %s1431_s26 = sphi %s1529_s26, %s1776_s26   ;;  %s1427_s25 = sphi %s1527_s25, %s1770_s25   ;;  %s1423_s24 = sphi %s1525_s24, %s1769_s24   ;;  %s1419_s23 = sphi %s1523_s23, %s1775_s23   ;;  %s1415_s22 = sphi %s1521_s22, %s1774_s22   ;;  %s1411_s21 = sphi %s1519_s21, %s1773_s21  }
   0x9   : > { %1758 = sst [smem:[#allocation10_spill]] %s1431_s26  ;;  %s1130_s30 = sadd.s32 4294967294, %s1439_s28  }
   0xa   : > { %1759 = sst [smem:[#allocation11_spill]] %s1435_s27  ;;  %s34_s13 = sadd.s32 1, %s1431_s26 }
   0xb   : > { %s37_s14 = sadd.s32 1, %s1435_s27  ;;  %p35_p0 = scmp.ge.s32.totalorder %s34_s13, 4 }
   0xc   : > { %s1131_s15 = sadd.s32 4294967294, %s1431_s26  ;;  %s84_s16 = sadd.s32 1, %s1419_s23 }
   0xd   : > { %p74_p1 = scmp.gt.s32.totalorder %s1131_s15, 0  ;;  %s1779_s13 = smov (%p35_p0, %s34_s13), 0 }
   0xe   : > { %1760 = sst [smem:[#allocation12_spill]] %s1779_s13  ;;  %s1781_s14 = smov (!%p35_p0, %s37_s14), %s1435_s27 }
   0xf   : > { %s1783_s15 = smov (!%p74_p1, %s1131_s15), 0  ;;  %p39_p2 = scmp.ge.s32.totalorder %s1781_s14, 2 }
  0x10   : > { %s1132_s17 = sadd.s32 4294967294, %s1779_s13  ;;  %p91_p4 = scmp.ne.s32.totalorder %s1419_s23, %s1415_s22 }
  0x11   : > { %p77_p3 = scmp.gt.s32.totalorder %s1132_s17, 0  ;;  %s1785_s14 = smov (%p39_p2, %s1781_s14), 0 }
  0x12   : > { %1761 = sst [smem:[#allocation13_spill]] %s1785_s14  ;;  %s79_s18 = ssub.s32 %s1435_s27, %s1785_s14 }
  0x13   : > { %s1787_s17 = smov (!%p77_p3, %s1132_s17), 0  ;;  %p92_p5 = scmp.eq.s32.totalorder %s1439_s28, 0 }
  0x14   : > { %s80_s19 = ssub.s32 %s1783_s15, %s1787_s17  ;;  %p339_p6 = scmp.eq.s32.totalorder %s1129_s29, 7 }
  0x15   : > { %s81_s20 = sor.u32 %s80_s19, %s79_s18  ;;  %p93_p7 = por %p92_p5, %p91_p4 }
  0x16   : > { %p82_p8 = scmp.eq.s32.totalorder %s81_s20, 0  ;;  %p1576_p9 = por %p339_p6, %p91_p4 }
  0x17   : > { %p344_p10 = scmp.ne.s32.totalorder %s1415_s22, %s1411_s21  ;;  %p345_p11 = scmp.eq.s32.totalorder %s1130_s30, 7 }
  0x18   : > { %s1583_s13 = scalar_select %p82_p8, %s1419_s23, %s84_s16  }
  0x19   : > { %p1585_p12 = por %p345_p11, %p344_p10  ;;  %p1136_p13 = scmp.ge.s32.totalorder %s1439_s28, 8 }
  0x1a   : > { %1763 = sst [smem:[#allocation14_spill]] %s1583_s13 }
  0x1b   : > { %391 = sbr.rel (%p1136_p13) target bundleno = 43 (0x2b), region = 56 }
  0x20   : > { %409 = sbr.rel (!%p93_p7) target bundleno = 43 (0x2b), region = 64  ;;  %s411_s29 = sand.u32 (%p93_p7), 1, %s1419_s23  }
  0x21   : > { %s1139_s17 = sshll.u32 (%p93_p7), %s1435_s27, 2  ;;  %s1137_s18 = sshll.u32 (%p93_p7), %s411_s29, 4 }
  0x22   : > { %s418_s19 = sadd.s32 (%p93_p7), %s1139_s17, %s1783_s15  ;;  %s1765_s1 = sld [smem:[#allocation15_spill]] (%p93_p7) }
  0x23   : > { %s1140_s20 = sshll.u32 (%p93_p7), %s418_s19, 3  ;;  %s413_s16 = scalar_lea.vmem (%p93_p7), [#allocation5], %s1137_s18 }
  0x28   : > { %s420_s30 = scalar_lea.vmem %s1765_s1, %s1140_s20 }
  0x29   : > { %v451_v0 = vld [vmem:[%s420_s30] sm:$0xff]  ;;  %v453_v1 = vld [vmem:[%s420_s30 + $0x10] sm:$0xff] }
  0x2a   : > { %452 = vst [vmem:[%s413_s16] sm:$0xff] %v451_v0  ;;  %454 = vst [vmem:[%s413_s16 + $0x8] sm:$0xff] %v453_v1 }
  0x2b PF: > { %p1141_p0 = scmp.ge.s32.totalorder %s1439_s28, 1  ;;  %p459_p1 = scmp.lt.s32.totalorder %s1439_s28, 9 }
  0x2d   : > { %p460_p2 = pnand %p1141_p0, %p459_p1 }
  0x2e   : > { %s1598_s21 = sand.u32 (!%p460_p2), 1, %s1415_s22   ;;  %p517_p3 = scmp.lt.s32.totalorder (!%p460_p2), %s1423_s24, 1 }
  0x2f   : > { %463 = sbr.rel (%p460_p2) target bundleno = 1341 (0x53d), region = 102  ;;  %s1142_s14 = sshll.u32 (!%p460_p2), %s1598_s21, 4 }
  0x30   : > { %s1143_s15 = sshll.u32 (!%p460_p2), %s1598_s21, 3  ;;  %p519_p4 = scmp.lt.s32.totalorder (!%p460_p2), %s1427_s25, 1 }
  0x31   : > { %s1609_s27 = scalar_lea.vmem (!%p460_p2), [#allocation5], %s1142_s14  ;;  %s1611_s13 = scalar_lea.vmem (!%p460_p2), [#allocation6], %s1143_s15 }
  0x32   : > { %p1149_p5 = scmp.ge.s32.totalorder (!%p460_p2), %s1423_s24, 2 }
  0x34   : > { %s518_s29 = scalar_select %p517_p3, %s1423_s24, 1 }
  0x35   : > { %s520_s17 = scalar_select %p519_p4, %s1427_s25, 1 }
  0x36   : > { %s1789_s29 = smov (!%p517_p3, %s518_s29), 1  ;;  %539 = sbr.rel (%p1149_p5) target bundleno = 858 (0x35a), region = 110 }
  0x37   : > { %s1147_s18 = sshll.u32 %s520_s17, 1  ;;  %p1150_p6 = scmp.ne.s32.totalorder (!%p1149_p5), %s1423_s24, 0 }
  0x38   : > { %s524_s19 = sadd.s32 %s1147_s18, %s1789_s29 }
  0x39   : > { %s1148_s20 = sshll.u32 %s524_s19, 3 }
  0x3a   : > { %s526_s1 = scalar_lea.vmem %s1736_s0, %s1148_s20 }
  0x3b   : > { %543 = sbr.rel (%p1150_p6) target bundleno = 66 (0x42), region = 114 }
  0x40   : > { %v1441_v2 = vmov 0.0  }
  0x41   : > { %544 = vst [vmem:[#allocation3] sm:$0xff] %v1441_v2  ;;  %545 = vst [vmem:[#allocation3 + $0x8] sm:$0xff] %v1441_v2 }
  0x42 PF: > { %v546_v3 = vld [vmem:[%s526_s1] sm:$0xff]  ;;  %vm571_vm0 = vcmask 1043456   ;;  %v1442_v4 = vmov 0.0   ;;  %vm1443_vm1 = vmmov 0   ;;  %v1444_v7 = vmov 0   ;;  %v551_v10 = vld [vmem:[%s1739_s3 + $0x8] sm:$0xff] }
  0x43   : > { %1213 = vmatprep.subr.bf16.mxu0 %v1442_v4  ;;  %v547_v5 = vpack.c.bf16 %v546_v3, %v546_v3  ;;  %1215 = vmatprep.mubr.msk.bf16.mxu0 %vm1443_vm1, %v1442_v4  ;;  %v550_v6 = vld [vmem:[%s1739_s3] sm:$0xff]  ;;  %vm567_vm2 = vcmask 64512   ;;  %s1183_s19 = sshll.u32 %s1423_s24, 3  ;;  %p1157_p7 = scmp.ne.s32.totalorder %s1423_s24, 1 }
  0x44   : > { %1326 = vset.pattern.permute.xlu0 %v1444_v7  ;;  %v1327_v9 = vld [vmem:[%s1738_s2] sm:$0xff]   ;;  %s628_s20 = scalar_lea.vmem [#allocation2], %s1183_s19 }
  0x45   : > { %v573_v8 = vsel %vm571_vm0, %v547_v5, 0  ;;  %554 = vperm.xlu0 %1326, %v550_v6  }
  0x46   : > { %1214 = vmatpush3.bf16.msra.mxu0 %v573_v8 }
  0x48   : > { %v631_v14 = vld [vmem:[#allocation3] sm:$0xff]  ;;  %v632_v21 = vld [vmem:[#allocation3 + $0x8] sm:$0xff] }
  0x49   : > { %1216 = vmatmul.mubr.msk.bf16.vlgmr.msra.gmra.mxu0 %vm567_vm2, %v1327_v9  ;;  %559 = vperm.xlu0 %1326, %v551_v10  }
  0xc0   : > { %v555_v11 = vpop.permute.xlu0 %554 }
  0xc4   : > { %v560_v17 = vpop.permute.xlu0 %559 }
 0x109   : > { %v609_v12 = vpop.f32.mrf.mxu0 }
 0x10a   : > { %v610_v13 = vadd.f32 %v609_v12, %v555_v11 }
 0x10b   : > { %v1217_v15 = vpop.f32.mrf.mxu0 }
 0x10c   : > { %v616_v16 = vmax.f32 %v610_v13, 0.0 }
 0x10d   : > { %v612_v18 = vpop.f32.mrf.mxu0 }
 0x10e   : > { %v633_v19 = vadd.f32 %v631_v14, %v616_v16  ;;  %v613_v20 = vadd.f32 %v612_v18, %v560_v17 }
 0x10f   : > { %v1218_v22 = vpop.f32.mrf.mxu0 }
 0x110   : > { %635 = vst [vmem:[#allocation3] sm:$0xff] %v633_v19  ;;  %v617_v23 = vmax.f32 %v613_v20, 0.0  ;;  %640 = sbr.rel (%p1157_p7) target bundleno = 858 (0x35a), region = 118 }
 0x112   : > { %v1190_v24 = vpack.c.bf16 %v617_v23, %v616_v16  ;;  %v634_v25 = vadd.f32 %v632_v21, %v617_v23 }
 0x114   : > { %1191 = vst [vmem:[%s628_s20] sm:$0xff] %v1190_v24   ;;  %636 = vst [vmem:[#allocation3 + $0x8] sm:$0xff] %v634_v25 }
 0x115   : > { %v1445_v28 = vmov 0.0   ;;  %vm1446_vm3 = vmmov 0   ;;  %v649_v33 = vld [vmem:[%s1740_s4] sm:$0xf]  ;;  %vm651_vm4 = vcmask 130048   ;;  %vm730_vm5 = vcmask 31744  }
 0x116   : > { %1219 = vmatprep.subr.mxu0 %v1445_v28  ;;  %1223 = vmatprep.mubr.msk.f32.mxu0 %vm1446_vm3, %v1445_v28  ;;  %v726_v34 = vld [vmem:[%s1742_s6] sm:$0xff]  ;;  %v727_v40 = vld [vmem:[%s1742_s6 + $0x8] sm:$0xff]  ;;  %vm827_vm6 = vcmask 7168  }
 0x117   : > { %v641_v27 = vld [vmem:[#allocation3] sm:$0xff]  ;;  %1228 = vmatprep.mubr.msk.f32.mxu1 %vm730_vm5, %v726_v34  ;;  %v650_v35 = vld [vmem:[%s1741_s5] sm:$0xf]  ;;  %v729_v41 = vld [vmem:[%s1743_s7 + $0x8] sm:$0xff] }
 0x118   : > { %v728_v43 = vld [vmem:[%s1743_s7] sm:$0xff] }
 0x11b   : > { %v642_v26 = vld [vmem:[#allocation3 + $0x8] sm:$0xff] }
 0x11c   : > { %645 = vadd.xlane.f32.xlu0 %v642_v26 }
 0x120   : > { %643 = vadd.xlane.f32.xlu0 %v641_v27 }
 0x1a5   : > { %v646_v29 = vpop.xlane.xlu0 %645 }
 0x1a6   : > { %v648_v30 = vmul.f32 0.00390625, %v646_v29 }
 0x1a8   : > { %1220 = vmatpush3.msra.mxu0 %v648_v30 }
 0x1a9   : > { %v644_v31 = vpop.xlane.xlu0 %643  ;;  %1221 = vmatprep.subr.mxu0 %v1445_v28 }
 0x1aa   : > { %v647_v32 = vmul.f32 0.00390625, %v644_v31 }
 0x1ac   : > { %1222 = vmatpush3.msra.mxu0 %v647_v32 }
 0x1ad   : > { %1224 = vmatmul.mubr.msk.f32.vlgmr.msra.gmra.mxu0 %vm651_vm4, %v649_v33 }
 0x26d   : > { %v721_v36 = vpop.f32.mrf.mxu0 }
 0x26e   : > { %v722_v37 = vadd.f32 %v721_v36, %v650_v35 }
 0x26f   : > { %v1225_v38 = vpop.f32.mrf.mxu0 }
 0x270   : > { %v725_v39 = vmax.f32 %v722_v37, 0.0 }
 0x272   : > { %1226 = vmatprep.subr.msk.mxu1 %vm571_vm0, %v725_v39 }
 0x273   : > { %1227 = vmatpush3.msk.msra.mxu1 %vm571_vm0, %v725_v39 }
 0x274   : > { %1229 = vmatmul.mubr.msk.f32.vlgmr.msra.gmra.mxu1 %vm730_vm5, %v727_v40 }
 0x334   : > { %v1230_v42 = vpop.f32.mrf.mxu1 }
 0x335   : > { %v812_v44 = vadd.f32 %v1230_v42, %v729_v41 }
 0x336   : > { %v806_v45 = vpop.f32.mrf.mxu1 }
 0x337   : > { %v1163_v46 = vmul.f32 -1.442695, %v812_v44  ;;  %v807_v47 = vadd.f32 %v806_v45, %v728_v43 }
 0x339   : > { %1328 = vpow2.f32 %v1163_v46  ;;  %v1162_v48 = vmul.f32 -1.442695, %v807_v47 }
 0x33b   : > { %1330 = vpow2.f32 %v1162_v48 }
 0x346   : > { %v1329_v49 = vpop.eup %1328 }
 0x347   : > { %v822_v50 = vadd.f32 1.0, %v1329_v49 }
 0x348   : > { %v1331_v51 = vpop.eup %1330 }
 0x349   : > { %1332 = vrcp.f32 %v822_v50  ;;  %v821_v52 = vadd.f32 1.0, %v1331_v51 }
 0x34b   : > { %1334 = vrcp.f32 %v821_v52 }
 0x356   : > { %v1333_v53 = vpop.eup %1332 }
 0x357   : > { %829 = vst.msk [vmem:[#allocation4 + $0x8] sm:$0xff] %vm827_vm6, %v1333_v53 }
 0x358   : > { %v1335_v54 = vpop.eup %1334 }
 0x359   : > { %828 = vst.msk [vmem:[#allocation4] sm:$0xff] %vm827_vm6, %v1335_v54 }
 0x35a PF: > { %p1164_p8 = scmp.lt.s32.totalorder %s1423_s24, 2 }
 0x35b   : > { %s1165_s16 = sadd.s32 (!%p1164_p8), 4294967294, %s1423_s24 }
 0x35c   : > { %833 = sbr.rel (%p1164_p8) target bundleno = 1312 (0x520), region = 122  ;;  %s1184_s14 = sshll.u32 (!%p1164_p8), %s1165_s16, 3 }
 0x35d   : > { %s839_s15 = scalar_lea.vmem (!%p1164_p8), [#allocation2], %s1184_s14 }
 0x361   : > { %v1649_v55 = vld [vmem:[%s1609_s27] sm:$0xff]  ;;  %v1652_v56 = vld [vmem:[%s1609_s27 + $0x8] sm:$0xff]  ;;  %v1447_v57 = vmov 0.0   ;;  %vm1448_vm7 = vmmov 0   ;;  %v1449_v60 = vmov 0   ;;  %vm852_vm8 = vcmask 130048  }
 0x362   : > { %1231 = vmatprep.subr.bf16.mxu0 %v1447_v57  ;;  %v845_v58 = vpack.c.bf16 %v1652_v56, %v1649_v55  ;;  %1233 = vmatprep.mubr.msk.bf16.mxu0 %vm1448_vm7, %v1447_v57  ;;  %v846_v59 = vld [vmem:[%s1745_s9] sm:$0xf]  ;;  %v979_v63 = vld [vmem:[#allocation4 + $0x8] sm:$0xff]  ;;  %vm921_vm9 = vcmask 1041408   ;;  %vm917_vm10 = vcmask 31744  }
 0x363   : > { %1336 = vset.pattern.permute.xlu0 %v1449_v60  ;;  %1237 = vmatprep.subr.bf16.mxu1 %v1447_v57  ;;  %v844_v61 = vld [vmem:[%s1744_s8] sm:$0x3]  ;;  %v901_v0 = vld [vmem:[%s1747_s11 + $0x8] sm:$0xff] }
 0x364   : > { %1232 = vmatpush3.bf16.msra.mxu0 %v845_v58  ;;  %849 = vperm.xlu0 %1336, %v846_v59   ;;  %v900_v62 = vld [vmem:[%s1747_s11] sm:$0xff] }
 0x365   : > { %1239 = vmatprep.mubr.msk.bf16.mxu1 %vm1448_vm7, %v1447_v57  ;;  %1337 = vset.pattern.permute.xlu1 %v1449_v60  ;;  %v978_v1 = vld [vmem:[#allocation4] sm:$0xff] }
 0x366   : > { %909 = vperm.xlu1 %1337, %v901_v0   ;;  %v1338_v11 = vld [vmem:[%s1746_s10] sm:$0xff]  }
 0x367   : > { %1234 = vmatmul.mubr.msk.bf16.vlgmr.msra.gmra.mxu0 %vm852_vm8, %v844_v61  ;;  %v1193_v26 = vld [vmem:[%s839_s15] sm:$0xff]  }
 0x368   : > { %904 = vperm.xlu0 %1336, %v900_v62   ;;  %v1194_v27 = vunpack.c.l.bf16 %v1193_v26  ;;  %v1195_v29 = vunpack.c.h.bf16 %v1193_v26 }
 0x36a   : > { %982 = vperm.xlu1 %1337, %v978_v1  }
 0x36c   : > { %987 = vperm.xlu0 %1336, %v979_v63  }
 0x3df   : > { %v850_v2 = vpop.permute.xlu0 %849 }
 0x3e1   : > { %v910_v17 = vpop.permute.xlu1 %909 }
 0x3e3   : > { %v905_v12 = vpop.permute.xlu0 %904 }
 0x3e5   : > { %v983_v31 = vpop.permute.xlu1 %982 }
 0x3e6   : > { %v990_v35 = vmul.f32 %v983_v31, %v1649_v55 }
 0x3e7   : > { %v988_v30 = vpop.permute.xlu0 %987 }
 0x3e8   : > { %v991_v34 = vmul.f32 %v988_v30, %v1652_v56 }
 0x427   : > { %v890_v3 = vpop.f32.mrf.mxu0 }
 0x428   : > { %v891_v4 = vadd.f32 %v890_v3, %v850_v2 }
 0x429   : > { %v1235_v5 = vpop.f32.mrf.mxu0 }
 0x42a   : > { %v896_v6 = vmax.f32 %v891_v4, 0.0 }
 0x42b   : > { %v893_v7 = vpop.f32.mrf.mxu0 }
 0x42c   : > { %v899_v8 = vpack.c.bf16 %v896_v6, %v896_v6 }
 0x42d   : > { %v1236_v9 = vpop.f32.mrf.mxu0 }
 0x42e   : > { %v923_v10 = vsel %vm921_vm9, %v899_v8, 0 }
 0x42f   : > { %1238 = vmatpush3.bf16.msra.mxu1 %v923_v10 }
 0x432   : > { %1240 = vmatmul.mubr.msk.bf16.vlgmr.msra.gmra.mxu1 %vm917_vm10, %v1338_v11 }
 0x4f2   : > { %v959_v13 = vpop.f32.mrf.mxu1 }
 0x4f3   : > { %v960_v14 = vadd.f32 %v959_v13, %v905_v12 }
 0x4f4   : > { %v1241_v15 = vpop.f32.mrf.mxu1 }
 0x4f5   : > { %v1171_v16 = vmul.f32 -1.442695, %v960_v14 }
 0x4f6   : > { %v962_v18 = vpop.f32.mrf.mxu1 }
 0x4f7   : > { %1339 = vpow2.f32 %v1171_v16  ;;  %v963_v19 = vadd.f32 %v962_v18, %v910_v17 }
 0x4f8   : > { %v1242_v20 = vpop.f32.mrf.mxu1 }
 0x4f9   : > { %v1172_v21 = vmul.f32 -1.442695, %v963_v19 }
 0x4fb   : > { %1341 = vpow2.f32 %v1172_v21 }
 0x504   : > { %v1340_v22 = vpop.eup %1339 }
 0x505   : > { %v972_v23 = vadd.f32 1.0, %v1340_v22 }
 0x507   : > { %1343 = vrcp.f32 %v972_v23 }
 0x508   : > { %v1342_v24 = vpop.eup %1341 }
 0x509   : > { %v973_v25 = vadd.f32 1.0, %v1342_v24 }
 0x50b   : > { %1345 = vrcp.f32 %v973_v25 }
 0x514   : > { %v1344_v28 = vpop.eup %1343 }
 0x515   : > { %v992_v32 = vmul.f32 %v1344_v28, %v1194_v27 }
 0x517   : > { %v994_v37 = vadd.f32 %v992_v32, %v990_v35 }
 0x518   : > { %v1346_v33 = vpop.eup %1345 }
 0x519   : > { %v993_v36 = vmul.f32 %v1346_v33, %v1195_v29 }
 0x51b   : > { %v995_v38 = vadd.f32 %v993_v36, %v991_v34 }
 0x51d   : > { %v1199_v39 = vpack.c.bf16 %v995_v38, %v994_v37 }
 0x51f   : > { %1200 = vst [vmem:[%s1611_s13] sm:$0xff] %v1199_v39  }
 0x520 PF: > { %s1176_s29 = sadd.s32 4294967294, %s1423_s24  ;;  %s1177_s17 = sshll.u32 %s1427_s25, 2 }
 0x521   : > { %p1015_p10 = scmp.gt.s32.totalorder %s1176_s29, 0  ;;  %s1024_s27 = sshll.u32 %s1611_s13, 4  ;;  %s1678_s27 = int_to_ptr.vmem [resolvable:$true] %s1024_s27 }
 0x522   : > { %s1766_s30 = sld [smem:[#allocation16_spill]]  ;;  %s1007_s14 = scalar_lea.sflag [#allocation7], %s1598_s21 }
 0x523   : > { %s1791_s29 = smov (!%p1015_p10, %s1176_s29), 0  ;;  %s1347_s15 = scalar_lea.vmem %s1678_s27, 128 }
 0x524   : > { %s1021_s1 = sadd.s32 %s1177_s17, %s1791_s29  ;;  %p1348_p11 = scmp.ne.s32.totalorder %s1678_s27, %s1347_s15 }
 0x525   : > { %s1178_s18 = sshll.u32 %s1021_s1, 6  ;;  %s1450_s24 = smov [#allocation6]  }
 0x526   : > { %p1349_p13 = pnand %p1348_p11, %p1576_p9  ;;  %s1351_s25 = sshll.u32 %s1450_s24, 4  ;;  %s1352_s25 = int_to_ptr.vmem [resolvable:$false] %s1351_s25 }
 0x527   : > { %s1353_s13 = scalar_lea.vmem %s1352_s25, 256  ;;  %p1354_p1 = scmp.lt.s32.totalorder %s1678_s27, %s1352_s25 }
 0x528   : > { %s1683_s16 = scalar_lea.hbm %s1766_s30, %s1178_s18  ;;  %p1350_p0 = pneg %p1349_p13 }
 0x529   : > { %p1355_p2 = scmp.lt.s32.totalorder %s1353_s13, %s1347_s15 }
 0x52b   : > { %p1356_p3 = por %p1355_p2, %p1354_p1 }
 0x52d   : > { %p1357_p4 = pnand %p1356_p3, %p1350_p0 }
 0x52f   : > { %1360 = shalt.err (!%p1357_p4)
}
 0x530   : > { %s1361_s29 = scalar_lea.hbm %s1683_s16, 128  ;;  %s1365_s18 = scalar_lea.hbm %s1766_s30, 512 }
 0x531   : > { %p1362_p5 = scmp.ne.s32.totalorder %s1683_s16, %s1361_s29  ;;  %p1366_p8 = scmp.lt.s32.totalorder %s1683_s16, %s1766_s30 }
 0x532   : > { %p1367_p10 = scmp.lt.s32.totalorder %s1365_s18, %s1361_s29 }
 0x533   : > { %p1363_p6 = pnand %p1362_p5, %p1576_p9 }
 0x534   : > { %p1368_p11 = por %p1367_p10, %p1366_p8 }
 0x535   : > { %p1364_p7 = pneg %p1363_p6 }
 0x537   : > { %p1369_p13 = pnand %p1368_p11, %p1364_p7 }
 0x539   : > { %1372 = shalt.err (!%p1369_p13)
}
 0x53a   : > { %s1451_s15 = smov 64   ;;  %s1452_s24 = smov 128  }
 0x53b   : > { %s1453_s25 = smov 4  }
 0x53c   : > { %1243 = dma.vmem_to_hbm [thread:$0]  (%p1576_p9), %s1678_s27, 128, %s1683_s16, %s1007_s14, %s1451_s15, %s1452_s24, %s1453_s25  }
 0x53d PF: > { %s1767_s13 = sld [smem:[#allocation9_spill]]  ;;  %p1249_p0 = scmp.ge.s32.totalorder %s1439_s28, 2 }
 0x53f   : > { %p1246_p1 = pnand %p1249_p0, %p1585_p12 }
 0x541   : > { %p1247_p2 = pneg %p1246_p1 }
 0x543   : > { %s1039_s17 = sand.u32 1, %s1767_s13  }
 0x544   : > { %s1040_s29 = scalar_lea.sflag [#allocation7], %s1039_s17 }
 0x545   : > { %1406 = dma.done.wait (%p1247_p2), %s1040_s29, 128  }
 0x546   : > { %1408 = vsyncadd (%p1247_p2), %s1040_s29, 4294967168  ;;  %s25_s28 = sadd.s32 1, %s1439_s28   ;;  %s1768_s26 = sld [smem:[#allocation14_spill]] }
 0x547   : > { %p22_p3 = scmp.ge.s32.totalorder %s25_s28, 10   ;;  %s1769_s24 = sld [smem:[#allocation10_spill]] }
 0x548   : > { %s1770_s25 = sld [smem:[#allocation11_spill]]  ;;  %s1773_s21 = smov %s1415_s22 }
 0x549   : > { %s1771_s27 = sld [smem:[#allocation12_spill]]  ;;  %s1774_s22 = smov %s1419_s23 }
 0x54a   : > { %s1772_s16 = sld [smem:[#allocation13_spill]] }
 0x54c   : > { %s1775_s23 = smov %s1768_s26  ;;  %24 = sbr.rel (!%p22_p3) target bundleno = 8 (0x8), region = 167 }
 0x54f   : > { %s1776_s26 = smov %s1771_s27 }
 0x550   : > { %s1777_s27 = smov %s1772_s16 }
 0x551   :  { %1045 = vsyncpa [#allocation7], 1 }
 0x552   :  { %1047 = vsyncpa [#allocation7 + $0x1], 1 }

</bundles_post_ra>
